<compile_context>
chip_gen: v6e
topology: v6e:2x2x1
jax: 0.10.0
libtpu: 0.0.40
codegen_flags: <defaults>
</compile_context>

<pallas_src>
import jax
import jax.numpy as jnp
from jax.experimental import pallas as pl
from jax.experimental.pallas import tpu as pltpu

IN_FEATURES = 128        # lane-dense (multiple of 128)
HIDDEN_FEATURES = 256    # lane-dense (multiple of 128)
BATCH = 2
SEQ = 64
EPS = 1e-5
_SQRT_2_OVER_PI = 0.7978845608028654


def _gelu_tanh(x):
    # TODO(synk): PyTorch nn.GELU() default is the exact erf form; the tanh
    # approximation is kept (perf review) since it lowers to the otherwise-idle
    # EUP tanh slot on Mosaic.  Outputs may differ ~1e-3 from exact-erf GELU.
    return 0.5 * x * (1.0 + jnp.tanh(_SQRT_2_OVER_PI * (x + 0.044715 * x * x * x)))


# ----------------------------- fused Pallas kernel -----------------------------
def _ffn_kernel(x_ref, lnw_ref, lnb_ref, w1_ref, b1_ref, w2_ref, b2_ref, o_ref):
    x = x_ref[...].astype(jnp.float32)                      # (rows, C)

    # LayerNorm(in_features) in f32
    mu = jnp.mean(x, axis=-1, keepdims=True)
    xc = x - mu
    var = jnp.mean(xc * xc, axis=-1, keepdims=True)
    h = xc * jax.lax.rsqrt(var + EPS) * lnw_ref[...] + lnb_ref[...]

    # fc1 -> GELU -> fc2; bf16 operands on the MXU, f32 accumulation.
    h1 = jnp.dot(h.astype(w1_ref.dtype), w1_ref[...],
                 preferred_element_type=jnp.float32) + b1_ref[...]
    g = _gelu_tanh(h1)
    out = jnp.dot(g.astype(w2_ref.dtype), w2_ref[...],
                  preferred_element_type=jnp.float32) + b2_ref[...]

    # Residual: re-load x_ref here (one cheap vld) rather than keeping the f32
    # copy of x live across both matmuls (vreg pressure at row_block=128).
    o_ref[...] = (out + x_ref[...].astype(jnp.float32)).astype(o_ref.dtype)


# ----------------------------- wrapper -----------------------------
def _tensorcores_per_chip():
    # v5e/v6e expose 1 TensorCore per chip; v7x (and v4/v5p megacore) expose 2.
    try:
        kind = jax.devices()[0].device_kind.lower()
    except Exception:
        return 1
    return 2 if any(tag in kind for tag in ("v7", "v5p", "v4")) else 1


def ffn_forward(x, params):
    """x: (B, L, C) -> (B, L, C); semantics of PyTorch FFN.forward."""
    b, l, c = x.shape
    rows = b * l
    hidden = params["w1"].shape[1]

    # Grid sizing: one row block per TensorCore.
    #   v5e/v6e -> grid=(1,): a single pipeline step (no wasted ~0.35 us step,
    #              no re-staging of replicated weight blocks).
    #   v7x     -> grid=(2,): "parallel" semantics shards the two row blocks
    #              across the two TensorCores.
    n_blocks = _tensorcores_per_chip()
    row_block = rows // max(n_blocks, 1)
    if n_blocks < 2 or row_block % 8 != 0 or rows % row_block != 0:
        n_blocks, row_block = 1, rows                       # tiny inputs: one block

    x2 = x.reshape(rows, c)                                 # flatten batch*seq rows
    rep = lambda i: (0, 0)                                  # replicated weight tiles

    w_bytes = (params["w1"].size * params["w1"].dtype.itemsize
               + params["w2"].size * params["w2"].dtype.itemsize)
    cost = pl.CostEstimate(
        flops=4 * rows * c * hidden,                        # fc1 + fc2
        transcendentals=rows * hidden,                      # tanh in GELU
        bytes_accessed=2 * rows * c * x.dtype.itemsize + w_bytes,
    )

    # VMEM note: weights are replicated into VMEM per tile (double-buffered by
    # default); fine at C=128/H=256 (<1 MiB total).
    # TODO(synk): at real transformer sizes (e.g. C=1024, H=4096) add a
    # hidden-dim "arbitrary" grid axis with a VMEM f32 accumulator + pl.when
    # init/finalize — v7x's 64 MiB VMEM is the binding constraint.
    out = pl.pallas_call(
        _ffn_kernel,
        out_shape=jax.ShapeDtypeStruct((rows, c), x.dtype),
        grid=(n_blocks,),
        in_specs=[
            pl.BlockSpec((row_block, c), lambda i: (i, 0)),     # x rows
            pl.BlockSpec((1, c), rep),                          # LayerNorm weight
            pl.BlockSpec((1, c), rep),                          # LayerNorm bias
            pl.BlockSpec((c, hidden), rep),                     # fc1 weight (in, out) bf16
            pl.BlockSpec((1, hidden), rep),                     # fc1 bias
            pl.BlockSpec((hidden, c), rep),                     # fc2 weight (in, out) bf16
            pl.BlockSpec((1, c), rep),                          # fc2 bias
        ],
        out_specs=pl.BlockSpec((row_block, c), lambda i: (i, 0)),
        compiler_params=pltpu.CompilerParams(
            dimension_semantics=("parallel",)),                 # multi-TC: split rows
        cost_estimate=cost,
    )(x2, params["ln_w"], params["ln_b"], params["w1"], params["b1"],
      params["w2"], params["b2"])
    return out.reshape(b, l, c)


# ----------------------------- parameters (matches _init_weights) -----------------------------
def init_params(key, in_features=IN_FEATURES, hidden_features=HIDDEN_FEATURES):
    def trunc_normal(k, shape, std=0.02):
        return std * jax.random.truncated_normal(k, -2.0, 2.0, shape, jnp.float32)

    k1, k2 = jax.random.split(key)
    return {
        "ln_w": jnp.ones((1, in_features), jnp.float32),
        "ln_b": jnp.zeros((1, in_features), jnp.float32),
        # stored pre-transposed (in, out) and in bf16: halves weight HBM traffic
        # and hits the native bf16 MXU path (f32 accumulation in-kernel).
        "w1": trunc_normal(k1, (in_features, hidden_features)).astype(jnp.bfloat16),
        "b1": jnp.zeros((1, hidden_features), jnp.float32),
        "w2": trunc_normal(k2, (hidden_features, in_features)).astype(jnp.bfloat16),
        "b2": jnp.zeros((1, in_features), jnp.float32),
    }


# ----------------------------- pure-JAX reference (same precision recipe) -----------------------------
def ffn_reference(x, params):
    xf = x.astype(jnp.float32)
    mu = jnp.mean(xf, axis=-1, keepdims=True)
    var = jnp.mean((xf - mu) ** 2, axis=-1, keepdims=True)
    h = (xf - mu) * jax.lax.rsqrt(var + EPS) * params["ln_w"][0] + params["ln_b"][0]
    h1 = jnp.dot(h.astype(params["w1"].dtype), params["w1"],
                 preferred_element_type=jnp.float32) + params["b1"][0]
    g = _gelu_tanh(h1)
    out = jnp.dot(g.astype(params["w2"].dtype), params["w2"],
                  preferred_element_type=jnp.float32) + params["b2"][0]
    return out + xf


# ----------------------------- main -----------------------------
if __name__ == "__main__":
    root = jax.random.PRNGKey(0)
    k_param, k_x = jax.random.split(root)

    params = init_params(k_param)
    x = jax.random.normal(k_x, (BATCH, SEQ, IN_FEATURES), jnp.float32)

    out = jax.jit(ffn_forward)(x, params)
    jax.block_until_ready(out)

    assert out.shape == (BATCH, SEQ, IN_FEATURES), out.shape
    assert bool(jnp.all(jnp.isfinite(out)))

    ref = ffn_reference(x, params)
    max_err = float(jnp.max(jnp.abs(out - ref)))
    # bf16 matmul operands (both kernel and reference) -> relaxed tolerance.
    assert bool(jnp.allclose(out, ref, atol=1e-2, rtol=1e-2)), max_err

    print("KERNEL_OK")
</pallas_src>

<mosaic_0001>
module attributes {stable_mosaic.version = 11 : i64} {
  func.func @_ffn_kernel(%arg0: i32, %arg1: memref<128x128xf32, #tpu.memory_space<vmem>>, %arg2: memref<1x128xf32, #tpu.memory_space<vmem>>, %arg3: memref<1x128xf32, #tpu.memory_space<vmem>>, %arg4: memref<128x256xbf16, #tpu.memory_space<vmem>>, %arg5: memref<1x256xf32, #tpu.memory_space<vmem>>, %arg6: memref<256x128xbf16, #tpu.memory_space<vmem>>, %arg7: memref<1x128xf32, #tpu.memory_space<vmem>>, %arg8: memref<128x128xf32, #tpu.memory_space<vmem>>) attributes {dimension_semantics = [#tpu.dimension_semantics<parallel>], iteration_bounds = array<i64: 1>, scalar_prefetch = 0 : i64, scratch_operands = 0 : i64, tpu.core_type = #tpu.core_type<tc>, window_params = [{transform_indices = @transform_0, window_bounds = array<i64: 128, 128>}, {pipeline_mode = #tpu.pipeline_mode<synchronous>, transform_indices = @transform_1, window_bounds = array<i64: 1, 128>}, {pipeline_mode = #tpu.pipeline_mode<synchronous>, transform_indices = @transform_2, window_bounds = array<i64: 1, 128>}, {pipeline_mode = #tpu.pipeline_mode<synchronous>, transform_indices = @transform_3, window_bounds = array<i64: 128, 256>}, {pipeline_mode = #tpu.pipeline_mode<synchronous>, transform_indices = @transform_4, window_bounds = array<i64: 1, 256>}, {pipeline_mode = #tpu.pipeline_mode<synchronous>, transform_indices = @transform_5, window_bounds = array<i64: 256, 128>}, {pipeline_mode = #tpu.pipeline_mode<synchronous>, transform_indices = @transform_6, window_bounds = array<i64: 1, 128>}, {transform_indices = @transform_7, window_bounds = array<i64: 128, 128>}]} {
    %c0 = arith.constant 0 : index
    %c0_0 = arith.constant 0 : index
    %0 = vector.load %arg1[%c0, %c0_0] : memref<128x128xf32, #tpu.memory_space<vmem>>, vector<128x128xf32>
    %cst = arith.constant dense<0.000000e+00> : vector<128xf32>
    %1 = vector.multi_reduction <add>, %0, %cst [1] : vector<128x128xf32> to vector<128xf32>
    %2 = vector.shape_cast %1 : vector<128xf32> to vector<128x1xf32>
    %cst_1 = arith.constant 1.280000e+02 : f32
    %3 = vector.broadcast %cst_1 : f32 to vector<128x1xf32>
    %4 = arith.divf %2, %3 : vector<128x1xf32>
    %5 = vector.broadcast %4 : vector<128x1xf32> to vector<128x128xf32>
    %6 = arith.subf %0, %5 : vector<128x128xf32>
    %7 = arith.mulf %6, %6 : vector<128x128xf32>
    %cst_2 = arith.constant dense<0.000000e+00> : vector<128xf32>
    %8 = vector.multi_reduction <add>, %7, %cst_2 [1] : vector<128x128xf32> to vector<128xf32>
    %9 = vector.shape_cast %8 : vector<128xf32> to vector<128x1xf32>
    %cst_3 = arith.constant 1.280000e+02 : f32
    %10 = vector.broadcast %cst_3 : f32 to vector<128x1xf32>
    %11 = arith.divf %9, %10 : vector<128x1xf32>
    %cst_4 = arith.constant 9.99999974E-6 : f32
    %12 = vector.broadcast %cst_4 : f32 to vector<128x1xf32>
    %13 = arith.addf %11, %12 : vector<128x1xf32>
    %14 = math.rsqrt %13 : vector<128x1xf32>
    %15 = vector.broadcast %14 : vector<128x1xf32> to vector<128x128xf32>
    %16 = arith.mulf %6, %15 : vector<128x128xf32>
    %c0_5 = arith.constant 0 : index
    %c0_6 = arith.constant 0 : index
    %17 = vector.load %arg2[%c0_5, %c0_6] : memref<1x128xf32, #tpu.memory_space<vmem>>, vector<1x128xf32>
    %18 = vector.broadcast %17 : vector<1x128xf32> to vector<128x128xf32>
    %19 = arith.mulf %16, %18 : vector<128x128xf32>
    %c0_7 = arith.constant 0 : index
    %c0_8 = arith.constant 0 : index
    %20 = vector.load %arg3[%c0_7, %c0_8] : memref<1x128xf32, #tpu.memory_space<vmem>>, vector<1x128xf32>
    %21 = vector.broadcast %20 : vector<1x128xf32> to vector<128x128xf32>
    %22 = arith.addf %19, %21 : vector<128x128xf32>
    %23 = arith.truncf %22 : vector<128x128xf32> to vector<128x128xbf16>
    %c0_9 = arith.constant 0 : index
    %c0_10 = arith.constant 0 : index
    %24 = vector.load %arg4[%c0_9, %c0_10] : memref<128x256xbf16, #tpu.memory_space<vmem>>, vector<128x256xbf16>
    %cst_11 = arith.constant dense<0.000000e+00> : vector<128x256xf32>
    %25 = tpu.matmul %23, %24, %cst_11 {dimension_numbers = #tpu.dot_dimension_numbers<[1], [0], [0], [1], [0, 0, 1, 1], [], []>} : vector<128x128xbf16>, vector<128x256xbf16>, vector<128x256xf32> -> vector<128x256xf32>
    %c0_12 = arith.constant 0 : index
    %c0_13 = arith.constant 0 : index
    %26 = vector.load %arg5[%c0_12, %c0_13] : memref<1x256xf32, #tpu.memory_space<vmem>>, vector<1x256xf32>
    %27 = vector.broadcast %26 : vector<1x256xf32> to vector<128x256xf32>
    %28 = arith.addf %25, %27 : vector<128x256xf32>
    %cst_14 = arith.constant 5.000000e-01 : f32
    %29 = vector.broadcast %cst_14 : f32 to vector<128x256xf32>
    %30 = arith.mulf %29, %28 : vector<128x256xf32>
    %cst_15 = arith.constant 4.471500e-02 : f32
    %31 = vector.broadcast %cst_15 : f32 to vector<128x256xf32>
    %32 = arith.mulf %31, %28 : vector<128x256xf32>
    %33 = arith.mulf %32, %28 : vector<128x256xf32>
    %34 = arith.mulf %33, %28 : vector<128x256xf32>
    %35 = arith.addf %28, %34 : vector<128x256xf32>
    %cst_16 = arith.constant 0.797884583 : f32
    %36 = vector.broadcast %cst_16 : f32 to vector<128x256xf32>
    %37 = arith.mulf %36, %35 : vector<128x256xf32>
    %38 = math.tanh %37 : vector<128x256xf32>
    %cst_17 = arith.constant 1.000000e+00 : f32
    %39 = vector.broadcast %cst_17 : f32 to vector<128x256xf32>
    %40 = arith.addf %39, %38 : vector<128x256xf32>
    %41 = arith.mulf %30, %40 : vector<128x256xf32>
    %42 = arith.truncf %41 : vector<128x256xf32> to vector<128x256xbf16>
    %c0_18 = arith.constant 0 : index
    %c0_19 = arith.constant 0 : index
    %43 = vector.load %arg6[%c0_18, %c0_19] : memref<256x128xbf16, #tpu.memory_space<vmem>>, vector<256x128xbf16>
    %cst_20 = arith.constant dense<0.000000e+00> : vector<128x128xf32>
    %44 = tpu.matmul %42, %43, %cst_20 {dimension_numbers = #tpu.dot_dimension_numbers<[1], [0], [0], [1], [0, 0, 1, 1], [], []>} : vector<128x256xbf16>, vector<256x128xbf16>, vector<128x128xf32> -> vector<128x128xf32>
    %c0_21 = arith.constant 0 : index
    %c0_22 = arith.constant 0 : index
    %45 = vector.load %arg7[%c0_21, %c0_22] : memref<1x128xf32, #tpu.memory_space<vmem>>, vector<1x128xf32>
    %46 = vector.broadcast %45 : vector<1x128xf32> to vector<128x128xf32>
    %47 = arith.addf %44, %46 : vector<128x128xf32>
    %c0_23 = arith.constant 0 : index
    %c0_24 = arith.constant 0 : index
    %48 = vector.load %arg1[%c0_23, %c0_24] : memref<128x128xf32, #tpu.memory_space<vmem>>, vector<128x128xf32>
    %49 = arith.addf %47, %48 : vector<128x128xf32>
    %c0_25 = arith.constant 0 : index
    %c0_26 = arith.constant 0 : index
    %50 = vector.load %arg8[%c0_25, %c0_26] : memref<128x128xf32, #tpu.memory_space<vmem>>, vector<128x128xf32>
    tpu.vector_store %arg8[%c0_25, %c0_26], %49 {strides = array<i32>} : memref<128x128xf32, #tpu.memory_space<vmem>>, vector<128x128xf32>,
    return
  }
  func.func @transform_0(%arg0: i32) -> (i32, i32) {
    %c0_i32 = arith.constant 0 : i32
    %c0_i32_0 = arith.constant 0 : i32
    return %arg0, %c0_i32 : i32, i32
  }
  func.func @transform_1(%arg0: i32) -> (i32, i32) {
    %c0_i32 = arith.constant 0 : i32
    %c0_i32_0 = arith.constant 0 : i32
    %c0_i32_1 = arith.constant 0 : i32
    return %c0_i32, %c0_i32_0 : i32, i32
  }
  func.func @transform_2(%arg0: i32) -> (i32, i32) {
    %c0_i32 = arith.constant 0 : i32
    %c0_i32_0 = arith.constant 0 : i32
    %c0_i32_1 = arith.constant 0 : i32
    return %c0_i32, %c0_i32_0 : i32, i32
  }
  func.func @transform_3(%arg0: i32) -> (i32, i32) {
    %c0_i32 = arith.constant 0 : i32
    %c0_i32_0 = arith.constant 0 : i32
    %c0_i32_1 = arith.constant 0 : i32
    return %c0_i32, %c0_i32_0 : i32, i32
  }
  func.func @transform_4(%arg0: i32) -> (i32, i32) {
    %c0_i32 = arith.constant 0 : i32
    %c0_i32_0 = arith.constant 0 : i32
    %c0_i32_1 = arith.constant 0 : i32
    return %c0_i32, %c0_i32_0 : i32, i32
  }
  func.func @transform_5(%arg0: i32) -> (i32, i32) {
    %c0_i32 = arith.constant 0 : i32
    %c0_i32_0 = arith.constant 0 : i32
    %c0_i32_1 = arith.constant 0 : i32
    return %c0_i32, %c0_i32_0 : i32, i32
  }
  func.func @transform_6(%arg0: i32) -> (i32, i32) {
    %c0_i32 = arith.constant 0 : i32
    %c0_i32_0 = arith.constant 0 : i32
    %c0_i32_1 = arith.constant 0 : i32
    return %c0_i32, %c0_i32_0 : i32, i32
  }
  func.func @transform_7(%arg0: i32) -> (i32, i32) {
    %c0_i32 = arith.constant 0 : i32
    %c0_i32_0 = arith.constant 0 : i32
    return %arg0, %c0_i32 : i32, i32
  }
}

</mosaic_0001>

<bundles_post_ra>
// kernel: ffn_forward.1
= control target key start
LH: loop header
LB: loop body
LE: loop exit
PB: predicated region body
PF: predicated region fallthrough
CT: control target
= control target key end

     0   :  { %12 = vsyncpa [#allocation3], 0  ;;  %s2030_s0 = inlined_call_operand.hbm [shape: f32[128,128], index: 0, kind: input, shape index: {}]   ;;  %s2031_s1 = inlined_call_operand.vmem [shape: f32[1,128], index: 1, kind: input, shape index: {}]   ;;  %s2032_s2 = inlined_call_operand.vmem [shape: f32[1,128], index: 2, kind: input, shape index: {}]   ;;  %s2033_s3 = inlined_call_operand.hbm [shape: bf16[128,256], index: 3, kind: input, shape index: {}]   ;;  %s2034_s4 = inlined_call_operand.vmem [shape: f32[1,256], index: 4, kind: input, shape index: {}]   ;;  %s2035_s5 = inlined_call_operand.hbm [shape: bf16[256,128], index: 5, kind: input, shape index: {}]   ;;  %s2036_s6 = inlined_call_operand.vmem [shape: f32[1,128], index: 6, kind: input, shape index: {}]   ;;  %s2037_s7 = inlined_call_operand.hbm [shape: f32[128,128], index: 7, kind: output, shape index: {}]  }
   0x1   :  { %13 = vsyncpa [#allocation6], 0 }
   0x2   :  { %14 = vsyncpa [#allocation4], 0  ;;  %s1469_s24 = smov [#allocation5]   ;;  %s1470_s26 = smov [#allocation2]  }
   0x3   :  { %s36_s25 = sshll.u32 %s1469_s24, 4  ;;  %s20_s27 = sshll.u32 %s1470_s26, 4  ;;  %s37_s25 = int_to_ptr.vmem [resolvable:$true] %s36_s25  ;;  %s21_s27 = int_to_ptr.vmem [resolvable:$true] %s20_s27 }
   0x4   :  { %s1391_s28 = scalar_lea.vmem %s37_s25, 2048  ;;  %p1396_p1 = scmp.lt.s32.totalorder %s37_s25, %s37_s25 }
   0x5   :  { %p1392_p0 = scmp.ne.s32.totalorder %s37_s25, %s1391_s28  ;;  %p1397_p2 = scmp.lt.s32.totalorder %s1391_s28, %s1391_s28 }
   0x7   :  { %p1398_p3 = por %p1397_p2, %p1396_p1 }
   0x9   :  { %p1399_p4 = pnand %p1398_p3, %p1392_p0 }
   0xb   :  { %1402 = shalt.err (!%p1399_p4)
}
   0xc   :  { %s1471_s29 = smov 128   ;;  %s1472_s30 = smov 8  }
   0xd   :  { %42 = dma.hbm_to_vmem [thread:$0]  %s2033_s3, 2048, %s37_s25, [#allocation6], %s1471_s29, %s1471_s29, %s1472_s30  }
   0xe   :  { %s1411_s10 = scalar_lea.vmem %s21_s27, 2048  ;;  %p1416_p6 = scmp.lt.s32.totalorder %s21_s27, %s21_s27 }
   0xf   :  { %p1412_p5 = scmp.ne.s32.totalorder %s21_s27, %s1411_s10  ;;  %p1417_p7 = scmp.lt.s32.totalorder %s1411_s10, %s1411_s10 }
  0x11   :  { %p1418_p8 = por %p1417_p7, %p1416_p6 }
  0x13   :  { %p1419_p9 = pnand %p1418_p8, %p1412_p5 }
  0x15   :  { %1422 = shalt.err (!%p1419_p9)
}
  0x16   :  { %26 = dma.hbm_to_vmem [thread:$0]  %s2030_s0, 2048, %s21_s27, [#allocation3], %s1471_s29, %s1471_s29, %s1472_s30  }
  0x17   :  { %s1473_s13 = smov [#allocation7]  }
  0x18   :  { %s50_s14 = sshll.u32 %s1473_s13, 4  ;;  %s51_s14 = int_to_ptr.vmem [resolvable:$true] %s50_s14 }
  0x19   :  { %s1431_s15 = scalar_lea.vmem %s51_s14, 2048  ;;  %p1436_p11 = scmp.lt.s32.totalorder %s51_s14, %s51_s14 }
  0x1a   :  { %p1432_p10 = scmp.ne.s32.totalorder %s51_s14, %s1431_s15  ;;  %p1437_p12 = scmp.lt.s32.totalorder %s1431_s15, %s1431_s15 }
  0x1c   :  { %p1438_p13 = por %p1437_p12, %p1436_p11 }
  0x1e   :  { %p1439_p0 = pnand %p1438_p13, %p1432_p10 }
  0x20   :  { %1442 = shalt.err (!%p1439_p0)
}
  0x21   :  { %s1474_s3 = smov 64   ;;  %s1475_s16 = smov 4  }
  0x22   :  { %56 = dma.hbm_to_vmem [thread:$0]  %s2035_s5, 2048, %s51_s14, [#allocation6], %s1474_s3, %s1474_s3, %s1475_s16  }
  0x23   :  { %1463 = dma.done.wait [#allocation3], 2048  }
  0x24   :  { %1464 = vsyncadd [#allocation3], 4294965248 }
  0x25   :  { %1465 = dma.done.wait [#allocation6], 4096  }
  0x26   :  { %1466 = vsyncadd [#allocation6], 4294963200  ;;  %v69_v0 = vld [vmem:[#allocation2] sm:$0xff]  ;;  %v71_v1 = vld [vmem:[#allocation2 + $0x10] sm:$0xff] }
  0x27   :  { %85 = vadd.xlane.f32.xlu0 %v69_v0  ;;  %89 = vadd.xlane.f32.xlu1 %v71_v1  ;;  %v70_v2 = vld [vmem:[#allocation2 + $0x8] sm:$0xff]  ;;  %v72_v3 = vld [vmem:[#allocation2 + $0x18] sm:$0xff]  ;;  %v73_v4 = vld [vmem:[#allocation2 + $0x20] sm:$0xff] }
  0x28   :  { %v74_v5 = vld [vmem:[#allocation2 + $0x28] sm:$0xff]  ;;  %v75_v6 = vld [vmem:[#allocation2 + $0x30] sm:$0xff]  ;;  %v76_v7 = vld [vmem:[#allocation2 + $0x38] sm:$0xff] }
  0x29   :  { %v1533_v8 = vld [vmem:[#allocation2 + $0x40] sm:$0xff]  ;;  %v1535_v9 = vld [vmem:[#allocation2 + $0x48] sm:$0xff]  ;;  %v1537_v10 = vld [vmem:[#allocation2 + $0x50] sm:$0xff] }
  0x2a   :  { %v1539_v11 = vld [vmem:[#allocation2 + $0x58] sm:$0xff]  ;;  %v1545_v12 = vld [vmem:[#allocation2 + $0x60] sm:$0xff]  ;;  %v1547_v13 = vld [vmem:[#allocation2 + $0x68] sm:$0xff] }
  0x2b   :  { %87 = vadd.xlane.f32.xlu0 %v70_v2  ;;  %91 = vadd.xlane.f32.xlu1 %v72_v3  ;;  %v1551_v14 = vld [vmem:[#allocation2 + $0x70] sm:$0xff]  ;;  %v1553_v15 = vld [vmem:[#allocation2 + $0x78] sm:$0xff]  ;;  %v1234_v53 = vld [vmem:[#allocation5 + $0x64] ss:$8 sps:$4 sm:$0xff]  }
  0x2c   :  { %v1231_v16 = vld [vmem:[#allocation5 + $0x74] ss:$8 sps:$4 sm:$0xff]   ;;  %v1233_v17 = vld [vmem:[#allocation5 + $0x70] ss:$8 sps:$4 sm:$0xff]   ;;  %v1236_v54 = vld [vmem:[#allocation5 + $0x60] ss:$8 sps:$4 sm:$0xff]  }
  0x2d   :  { %424 = vmatprep.subr.bf16.mxu0 %v1231_v16  ;;  %v1237_v63 = vld [vmem:[#allocation5 + $0x54] ss:$8 sps:$4 sm:$0xff]  }
  0x2e   :  { %425 = vmatpush1.bf16.msra.mxu0 %v1233_v17  ;;  %v1242_v17 = vld [vmem:[#allocation5 + $0x40] ss:$8 sps:$4 sm:$0xff]  }
  0x2f   :  { %93 = vadd.xlane.f32.xlu0 %v73_v4  ;;  %95 = vadd.xlane.f32.xlu1 %v74_v5 }
  0x30   :  { %426 = vmatprep.subr.bf16.mxu0 %v1234_v53 }
  0x32   :  { %427 = vmatpush1.bf16.msra.mxu0 %v1236_v54 }
  0x33   :  { %97 = vadd.xlane.f32.xlu0 %v75_v6  ;;  %99 = vadd.xlane.f32.xlu1 %v76_v7 }
  0x34   :  { %428 = vmatprep.subr.bf16.mxu0 %v1237_v63 }
  0x37   :  { %101 = vadd.xlane.f32.xlu0 %v1533_v8  ;;  %103 = vadd.xlane.f32.xlu1 %v1535_v9 }
  0x3b   :  { %105 = vadd.xlane.f32.xlu0 %v1537_v10  ;;  %107 = vadd.xlane.f32.xlu1 %v1539_v11 }
  0x3f   :  { %109 = vadd.xlane.f32.xlu0 %v1545_v12  ;;  %111 = vadd.xlane.f32.xlu1 %v1547_v13 }
  0x43   :  { %113 = vadd.xlane.f32.xlu0 %v1551_v14  ;;  %115 = vadd.xlane.f32.xlu1 %v1553_v15 }
  0xb0   :  { %v86_v18 = vpop.xlane.xlu0 %85  ;;  %v90_v19 = vpop.xlane.xlu1 %89 }
  0xb1   :  { %v118_v20 = vmul.f32 0.0078125, %v86_v18  ;;  %v120_v21 = vmul.f32 0.0078125, %v90_v19 }
  0xb3   :  { %v1557_v22 = vsub.f32 %v69_v0, %v118_v20  ;;  %v1559_v23 = vsub.f32 %v71_v1, %v120_v21 }
  0xb4   :  { %v88_v24 = vpop.xlane.xlu0 %87  ;;  %v92_v25 = vpop.xlane.xlu1 %91 }
  0xb5   :  { %v119_v26 = vmul.f32 0.0078125, %v88_v24  ;;  %v150_v27 = vmul.f32 %v1557_v22, %v1557_v22  ;;  %v121_v28 = vmul.f32 0.0078125, %v92_v25  ;;  %v152_v31 = vmul.f32 %v1559_v23, %v1559_v23 }
  0xb7   :  { %v1563_v29 = vsub.f32 %v70_v2, %v119_v26  ;;  %166 = vadd.xlane.f32.xlu0 %v150_v27  ;;  %v1565_v30 = vsub.f32 %v72_v3, %v121_v28  ;;  %v1239_v3 = vld [vmem:[#allocation5 + $0x50] ss:$8 sps:$4 sm:$0xff]  }
  0xb8   :  { %v94_v32 = vpop.xlane.xlu0 %93  ;;  %v96_v33 = vpop.xlane.xlu1 %95  ;;  %429 = vmatpush1.bf16.msra.mxu0 %v1239_v3  ;;  %v1245_v27 = vld [vmem:[#allocation5 + $0x30] ss:$8 sps:$4 sm:$0xff]  }
  0xb9   :  { %v122_v34 = vmul.f32 0.0078125, %v94_v32  ;;  %v151_v35 = vmul.f32 %v1563_v29, %v1563_v29  ;;  %v123_v36 = vmul.f32 0.0078125, %v96_v33  ;;  %v153_v39 = vmul.f32 %v1565_v30, %v1565_v30  ;;  %v1248_v32 = vld [vmem:[#allocation5 + $0x20] ss:$8 sps:$4 sm:$0xff]   ;;  %v1251_v33 = vld [vmem:[#allocation5 + $0x10] ss:$8 sps:$4 sm:$0xff]  }
  0xbb   :  { %v1571_v37 = vsub.f32 %v73_v4, %v122_v34  ;;  %170 = vadd.xlane.f32.xlu0 %v152_v31  ;;  %168 = vadd.xlane.f32.xlu1 %v151_v35  ;;  %v1573_v38 = vsub.f32 %v74_v5, %v123_v36  ;;  %v1246_v31 = vld [vmem:[#allocation5 + $0x24] ss:$8 sps:$4 sm:$0xff]   ;;  %v1254_v35 = vld [vmem:[#allocation5] ss:$8 sps:$4 sm:$0xff]   ;;  %v1476_v36 = vmov 0  }
  0xbc   :  { %v98_v40 = vpop.xlane.xlu0 %97  ;;  %v100_v41 = vpop.xlane.xlu1 %99  ;;  %v1252_v34 = vld [vmem:[#allocation5 + $0x4] ss:$8 sps:$4 sm:$0xff]   ;;  %456 = vmatprep.mubr.bf16.mxu0 %v1476_v36 }
  0xbd   :  { %v124_v42 = vmul.f32 0.0078125, %v98_v40  ;;  %v154_v43 = vmul.f32 %v1571_v37, %v1571_v37  ;;  %v125_v44 = vmul.f32 0.0078125, %v100_v41  ;;  %v155_v47 = vmul.f32 %v1573_v38, %v1573_v38 }
  0xbf   :  { %v1579_v45 = vsub.f32 %v75_v6, %v124_v42  ;;  %172 = vadd.xlane.f32.xlu1 %v153_v39  ;;  %174 = vadd.xlane.f32.xlu0 %v154_v43  ;;  %v1581_v46 = vsub.f32 %v76_v7, %v125_v44 }
  0xc0   :  { %v102_v48 = vpop.xlane.xlu0 %101  ;;  %v104_v49 = vpop.xlane.xlu1 %103 }
  0xc1   :  { %v126_v50 = vmul.f32 0.0078125, %v102_v48  ;;  %v156_v51 = vmul.f32 %v1579_v45, %v1579_v45  ;;  %v127_v52 = vmul.f32 0.0078125, %v104_v49  ;;  %v157_v57 = vmul.f32 %v1581_v46, %v1581_v46 }
  0xc3   :  { %v1588_v55 = vsub.f32 %v1533_v8, %v126_v50  ;;  %176 = vadd.xlane.f32.xlu1 %v155_v47  ;;  %178 = vadd.xlane.f32.xlu0 %v156_v51  ;;  %v1591_v56 = vsub.f32 %v1535_v9, %v127_v52  ;;  %v1240_v9 = vld [vmem:[#allocation5 + $0x44] ss:$8 sps:$4 sm:$0xff]  }
  0xc4   :  { %v106_v58 = vpop.xlane.xlu0 %105  ;;  %v108_v59 = vpop.xlane.xlu1 %107  ;;  %430 = vmatprep.subr.bf16.mxu0 %v1240_v9 }
  0xc5   :  { %v128_v60 = vmul.f32 0.0078125, %v106_v58  ;;  %v158_v61 = vmul.f32 %v1588_v55, %v1588_v55  ;;  %v129_v62 = vmul.f32 0.0078125, %v108_v59  ;;  %v159_v2 = vmul.f32 %v1591_v56, %v1591_v56  ;;  %431 = vmatpush1.bf16.msra.mxu0 %v1242_v17 }
  0xc7   :  { %v1598_v0 = vsub.f32 %v1537_v10, %v128_v60  ;;  %180 = vadd.xlane.f32.xlu1 %v157_v57  ;;  %182 = vadd.xlane.f32.xlu0 %v158_v61  ;;  %v1601_v1 = vsub.f32 %v1539_v11, %v129_v62 }
  0xc8   :  { %v110_v4 = vpop.xlane.xlu0 %109  ;;  %v112_v5 = vpop.xlane.xlu1 %111 }
  0xc9   :  { %v130_v6 = vmul.f32 0.0078125, %v110_v4  ;;  %v160_v7 = vmul.f32 %v1598_v0, %v1598_v0  ;;  %v131_v8 = vmul.f32 0.0078125, %v112_v5  ;;  %v161_v16 = vmul.f32 %v1601_v1, %v1601_v1  ;;  %v1634_v5 = vld [vmem:[%s2031_s1] ss:$0 sm:$0xff] }
  0xcb   :  { %v1608_v10 = vsub.f32 %v1545_v12, %v130_v6  ;;  %184 = vadd.xlane.f32.xlu1 %v159_v2  ;;  %186 = vadd.xlane.f32.xlu0 %v160_v7  ;;  %v1611_v11 = vsub.f32 %v1547_v13, %v131_v8  ;;  %v1243_v12 = vld [vmem:[#allocation5 + $0x34] ss:$8 sps:$4 sm:$0xff]  }
  0xcc   :  { %v114_v18 = vpop.xlane.xlu0 %113  ;;  %v116_v19 = vpop.xlane.xlu1 %115  ;;  %432 = vmatprep.subr.bf16.mxu0 %v1243_v12 }
  0xcd   :  { %v132_v20 = vmul.f32 0.0078125, %v114_v18  ;;  %v162_v21 = vmul.f32 %v1608_v10, %v1608_v10  ;;  %v133_v24 = vmul.f32 0.0078125, %v116_v19  ;;  %v163_v26 = vmul.f32 %v1611_v11, %v1611_v11  ;;  %433 = vmatpush1.bf16.msra.mxu0 %v1245_v27 }
  0xce   :  { %434 = vmatprep.subr.bf16.mxu0 %v1246_v31 }
  0xcf   :  { %v1618_v25 = vsub.f32 %v1551_v14, %v132_v20  ;;  %188 = vadd.xlane.f32.xlu1 %v161_v16  ;;  %190 = vadd.xlane.f32.xlu0 %v162_v21  ;;  %v1621_v13 = vsub.f32 %v1553_v15, %v133_v24  ;;  %v1249_v15 = vld [vmem:[#allocation5 + $0x14] ss:$8 sps:$4 sm:$0xff]   ;;  %v1641_v20 = vld [vmem:[%s2032_s2] ss:$0 sm:$0xff] }
  0xd1   :  { %v164_v28 = vmul.f32 %v1618_v25, %v1618_v25  ;;  %v165_v14 = vmul.f32 %v1621_v13, %v1621_v13  ;;  %435 = vmatpush1.bf16.msra.mxu0 %v1248_v32 }
  0xd2   :  { %436 = vmatprep.subr.bf16.mxu0 %v1249_v15 }
  0xd3   :  { %192 = vadd.xlane.f32.xlu1 %v163_v26  ;;  %194 = vadd.xlane.f32.xlu0 %v164_v28 }
  0xd5   :  { %437 = vmatpush1.bf16.msra.mxu0 %v1251_v33 }
  0xd6   :  { %438 = vmatprep.subr.bf16.mxu0 %v1252_v34 }
  0xd7   :  { %196 = vadd.xlane.f32.xlu1 %v165_v14 }
  0xd9   :  { %439 = vmatpush1.bf16.msra.mxu0 %v1254_v35 }
 0x140   :  { %v167_v39 = vpop.xlane.xlu0 %166 }
 0x141   :  { %v198_v40 = vmul.f32 0.0078125, %v167_v39 }
 0x143   :  { %v214_v41 = vadd.f32 1e-05, %v198_v40 }
 0x144   :  { %v169_v42 = vpop.xlane.xlu1 %168  ;;  %v171_v43 = vpop.xlane.xlu0 %170 }
 0x145   :  { %1271 = vrsqrt.f32 %v214_v41  ;;  %v199_v44 = vmul.f32 0.0078125, %v169_v42  ;;  %v200_v47 = vmul.f32 0.0078125, %v171_v43 }
 0x147   :  { %v215_v48 = vadd.f32 1e-05, %v199_v44  ;;  %v216_v49 = vadd.f32 1e-05, %v200_v47 }
 0x148   :  { %v173_v50 = vpop.xlane.xlu1 %172  ;;  %v175_v51 = vpop.xlane.xlu0 %174 }
 0x149   :  { %1273 = vrsqrt.f32 %v215_v48  ;;  %v201_v52 = vmul.f32 0.0078125, %v173_v50  ;;  %v202_v54 = vmul.f32 0.0078125, %v175_v51 }
 0x14a   :  { %1275 = vrsqrt.f32 %v216_v49 }
 0x14b   :  { %v217_v53 = vadd.f32 1e-05, %v201_v52  ;;  %v218_v59 = vadd.f32 1e-05, %v202_v54 }
 0x14c   :  { %v177_v57 = vpop.xlane.xlu1 %176  ;;  %v179_v61 = vpop.xlane.xlu0 %178 }
 0x14d   :  { %1277 = vrsqrt.f32 %v217_v53  ;;  %v203_v58 = vmul.f32 0.0078125, %v177_v57  ;;  %v204_v3 = vmul.f32 0.0078125, %v179_v61 }
 0x14f   :  { %v219_v60 = vadd.f32 1e-05, %v203_v58  ;;  %v220_v8 = vadd.f32 1e-05, %v204_v3 }
 0x150   :  { %v181_v62 = vpop.xlane.xlu1 %180  ;;  %v183_v16 = vpop.xlane.xlu0 %182 }
 0x151   :  { %1279 = vrsqrt.f32 %v219_v60  ;;  %v205_v63 = vmul.f32 0.0078125, %v181_v62  ;;  %v206_v12 = vmul.f32 0.0078125, %v183_v16 }
 0x152   :  { %v1272_v2 = vpop.eup %1271  ;;  %1281 = vrsqrt.f32 %v218_v59 }
 0x153   :  { %v246_v4 = vmul.f32 %v1272_v2, %v1557_v22  ;;  %v221_v6 = vadd.f32 1e-05, %v205_v63  ;;  %v222_v34 = vadd.f32 1e-05, %v206_v12 }
 0x154   :  { %v185_v9 = vpop.xlane.xlu1 %184  ;;  %v187_v40 = vpop.xlane.xlu0 %186 }
 0x155   :  { %v269_v18 = vmul.f32 %v1634_v5, %v246_v4  ;;  %1283 = vrsqrt.f32 %v221_v6  ;;  %v207_v22 = vmul.f32 0.0078125, %v185_v9  ;;  %v208_v42 = vmul.f32 0.0078125, %v187_v40 }
 0x156   :  { %v1274_v7 = vpop.eup %1273  ;;  %1285 = vrsqrt.f32 %v220_v8 }
 0x157   :  { %v247_v17 = vmul.f32 %v1274_v7, %v1563_v29  ;;  %v1276_v19 = vpop.eup %1275  ;;  %v292_v26 = vadd.f32 %v1641_v20, %v269_v18  ;;  %v223_v31 = vadd.f32 1e-05, %v207_v22  ;;  %v224_v53 = vadd.f32 1e-05, %v208_v42 }
 0x158   :  { %v248_v29 = vmul.f32 %v1276_v19, %v1559_v23  ;;  %v189_v15 = vpop.xlane.xlu1 %188  ;;  %v191_v57 = vpop.xlane.xlu0 %190 }
 0x159   :  { %v270_v21 = vmul.f32 %v1634_v5, %v247_v17  ;;  %1287 = vrsqrt.f32 %v223_v31  ;;  %v209_v41 = vmul.f32 0.0078125, %v189_v15  ;;  %v210_v59 = vmul.f32 0.0078125, %v191_v57  ;;  %v1259_v57 = vld [vmem:[#allocation7 + $0x68] sm:$0xff]  }
 0x15a   :  { %v1278_v24 = vpop.eup %1277  ;;  %v271_v35 = vmul.f32 %v1634_v5, %v248_v29  ;;  %1289 = vrsqrt.f32 %v222_v34 }
 0x15b   :  { %v293_v27 = vadd.f32 %v1641_v20, %v270_v21  ;;  %v249_v28 = vmul.f32 %v1278_v24, %v1565_v30  ;;  %v225_v47 = vadd.f32 1e-05, %v209_v41  ;;  %v226_v6 = vadd.f32 1e-05, %v210_v59  ;;  %v1266_v59 = vld [vmem:[#allocation7 + $0x10] sm:$0xff]  }
 0x15c   :  { %v294_v43 = vadd.f32 %v1641_v20, %v271_v35  ;;  %v193_v51 = vpop.xlane.xlu1 %192  ;;  %v195_v9 = vpop.xlane.xlu0 %194 }
 0x15d   :  { %v308_v14 = vpack.c.bf16 %v293_v27, %v292_v26  ;;  %v272_v33 = vmul.f32 %v1634_v5, %v249_v28  ;;  %1291 = vrsqrt.f32 %v225_v47  ;;  %v212_v17 = vmul.f32 0.0078125, %v195_v9 }
 0x15e   :  { %v1280_v32 = vpop.eup %1279  ;;  %1293 = vrsqrt.f32 %v224_v53  ;;  %v1255_v53 = vld [vmem:[#allocation7 + $0x78] sm:$0xff]  }
 0x15f   :  { %457 = vmatmul.mubr.bf16.vlgmr.msra.gmra.mxu0 %v308_v14  ;;  %v1282_v39 = vpop.eup %1281  ;;  %v295_v23 = vadd.f32 %v1641_v20, %v272_v33  ;;  %v251_v30 = vmul.f32 %v1280_v32, %v1573_v38  ;;  %v211_v38 = vmul.f32 0.0078125, %v193_v51  ;;  %v228_v26 = vadd.f32 1e-05, %v212_v17  ;;  %1158 = vmatprep.subr.bf16.mxu1 %v1255_v53 }
 0x160   :  { %466 = vmatprep.mubr.bf16.mxu0 %v1476_v36  ;;  %v250_v44 = vmul.f32 %v1282_v39, %v1571_v37  ;;  %v197_v4 = vpop.xlane.xlu1 %196 }
 0x161   :  { %v309_v48 = vpack.c.bf16 %v295_v23, %v294_v43  ;;  %v274_v49 = vmul.f32 %v1634_v5, %v251_v30  ;;  %v227_v62 = vadd.f32 1e-05, %v211_v38  ;;  %v1260_v38 = vld [vmem:[#allocation7 + $0x28] sm:$0xff]  }
 0x162   :  { %v1284_v50 = vpop.eup %1283  ;;  %v273_v54 = vmul.f32 %v1634_v5, %v250_v44 }
 0x163   :  { %v1286_v52 = vpop.eup %1285  ;;  %v297_v58 = vadd.f32 %v1641_v20, %v274_v49  ;;  %v253_v37 = vmul.f32 %v1284_v50, %v1581_v46  ;;  %1295 = vrsqrt.f32 %v227_v62  ;;  %v213_v46 = vmul.f32 0.0078125, %v197_v4  ;;  %v1269_v62 = vld [vmem:[#allocation7 + $0x40] sm:$0xff]  }
 0x164   :  { %v296_v60 = vadd.f32 %v1641_v20, %v273_v54  ;;  %v252_v61 = vmul.f32 %v1286_v52, %v1579_v45  ;;  %1297 = vrsqrt.f32 %v226_v6  ;;  %v1257_v54 = vld [vmem:[#allocation7 + $0x70] sm:$0xff]   ;;  %v332_v6 = vld [vmem:[%s2034_s4] sm:$0x3] }
 0x165   :  { %v276_v2 = vmul.f32 %v1634_v5, %v253_v37  ;;  %v229_v22 = vadd.f32 1e-05, %v213_v46  ;;  %v1265_v37 = vld [vmem:[#allocation7 + $0x50] sm:$0xff]  }
 0x166   :  { %v310_v63 = vpack.c.bf16 %v297_v58, %v296_v60  ;;  %v1288_v3 = vpop.eup %1287  ;;  %v275_v7 = vmul.f32 %v1634_v5, %v252_v61  ;;  %v1263_v58 = vld [vmem:[#allocation7 + $0x58] sm:$0xff]   ;;  %v1267_v60 = vld [vmem:[#allocation7 + $0x48] sm:$0xff]  }
 0x167   :  { %467 = vmatmul.mubr.bf16.gmra.mxu0 %v309_v48  ;;  %v1290_v8 = vpop.eup %1289  ;;  %v299_v16 = vadd.f32 %v1641_v20, %v276_v2  ;;  %v255_v45 = vmul.f32 %v1288_v3, %v1591_v56  ;;  %1299 = vrsqrt.f32 %v229_v22  ;;  %v1268_v61 = vld [vmem:[#allocation7 + $0x8] sm:$0xff]   ;;  %v334_v2 = vlaneseq }
 0x168   :  { %476 = vmatprep.mubr.bf16.mxu0 %v1476_v36  ;;  %v298_v18 = vadd.f32 %v1641_v20, %v275_v7  ;;  %v254_v19 = vmul.f32 %v1290_v8, %v1588_v55  ;;  %1301 = vrsqrt.f32 %v228_v26 }
 0x169   :  { %v278_v24 = vmul.f32 %v1634_v5, %v255_v45  ;;  %v335_v3 = vshrl.u32 %v334_v2, 7 }
 0x16a   :  { %v311_v21 = vpack.c.bf16 %v299_v16, %v298_v18  ;;  %v1292_v12 = vpop.eup %1291  ;;  %v277_v27 = vmul.f32 %v1634_v5, %v254_v19 }
 0x16b   :  { %v1294_v29 = vpop.eup %1293  ;;  %v301_v56 = vadd.f32 %v1641_v20, %v278_v24  ;;  %v257_v28 = vmul.f32 %v1292_v12, %v1601_v1  ;;  %v336_v4 = vsub.s32 0, %v335_v3  ;;  %v340_v7 = vsub.s32 1, %v335_v3 }
 0x16c   :  { %v300_v55 = vadd.f32 %v1641_v20, %v277_v27  ;;  %v256_v31 = vmul.f32 %v1294_v29, %v1598_v0 }
 0x16d   :  { %v280_v32 = vmul.f32 %v1634_v5, %v257_v28  ;;  %v1698_v8 = vrot.slane %v332_v6, %v336_v4  ;;  %v1700_v9 = vrot.slane %v332_v6, %v340_v7 }
 0x16e   :  { %v312_v14 = vpack.c.bf16 %v301_v56, %v300_v55  ;;  %v279_v33 = vmul.f32 %v1634_v5, %v256_v31 }
 0x16f   :  { %477 = vmatmul.mubr.bf16.gmra.mxu0 %v310_v63  ;;  %v303_v35 = vadd.f32 %v1641_v20, %v280_v32  ;;  %v1270_v63 = vld [vmem:[#allocation7] sm:$0xff]  }
 0x170   :  { %486 = vmatprep.mubr.bf16.mxu0 %v1476_v36  ;;  %v1296_v15 = vpop.eup %1295  ;;  %v302_v1 = vadd.f32 %v1641_v20, %v279_v33 }
 0x171   :  { %v1298_v34 = vpop.eup %1297  ;;  %v259_v39 = vmul.f32 %v1296_v15, %v1611_v11 }
 0x172   :  { %v258_v40 = vmul.f32 %v1298_v34, %v1608_v10  ;;  %v313_v41 = vpack.c.bf16 %v303_v35, %v302_v1 }
 0x173   :  { %v282_v0 = vmul.f32 %v1634_v5, %v259_v39 }
 0x174   :  { %v1300_v23 = vpop.eup %1299  ;;  %v281_v30 = vmul.f32 %v1634_v5, %v258_v40 }
 0x175   :  { %v1302_v42 = vpop.eup %1301  ;;  %v305_v43 = vadd.f32 %v1641_v20, %v282_v0  ;;  %v261_v44 = vmul.f32 %v1300_v23, %v1621_v13  ;;  %v1256_v13 = vld [vmem:[#allocation7 + $0x38] sm:$0xff]  }
 0x176   :  { %v304_v11 = vadd.f32 %v1641_v20, %v281_v30  ;;  %v260_v47 = vmul.f32 %v1302_v42, %v1618_v25  ;;  %1159 = vmatpush3.bf16.msra.mxu1 %v1256_v13  ;;  %v1258_v25 = vld [vmem:[#allocation7 + $0x30] sm:$0xff]  }
 0x177   :  { %487 = vmatmul.mubr.bf16.gmra.mxu0 %v311_v21  ;;  %v284_v10 = vmul.f32 %v1634_v5, %v261_v44  ;;  %1160 = vmatprep.subr.bf16.mxu1 %v1257_v54 }
 0x178   :  { %496 = vmatprep.mubr.bf16.mxu0 %v1476_v36  ;;  %v314_v48 = vpack.c.bf16 %v305_v43, %v304_v11  ;;  %v283_v49 = vmul.f32 %v1634_v5, %v260_v47  ;;  %v1261_v5 = vld [vmem:[#allocation7 + $0x60] sm:$0xff]  }
 0x179   :  { %v307_v50 = vadd.f32 %v1641_v20, %v284_v10 }
 0x17a   :  { %v306_v51 = vadd.f32 %v1641_v20, %v283_v49  ;;  %1161 = vmatpush3.bf16.msra.mxu1 %v1258_v25  ;;  %v1264_v20 = vld [vmem:[#allocation7 + $0x18] sm:$0xff]  }
 0x17b   :  { %1162 = vmatprep.subr.bf16.mxu1 %v1259_v57 }
 0x17c   :  { %v315_v52 = vpack.c.bf16 %v307_v50, %v306_v51 }
 0x17e   :  { %1163 = vmatpush3.bf16.msra.mxu1 %v1260_v38 }
 0x17f   :  { %497 = vmatmul.mubr.bf16.gmra.mxu0 %v312_v14  ;;  %1164 = vmatprep.subr.bf16.mxu1 %v1261_v5 }
 0x180   :  { %506 = vmatprep.mubr.bf16.mxu0 %v1476_v36 }
 0x187   :  { %507 = vmatmul.mubr.bf16.gmra.mxu0 %v313_v41 }
 0x188   :  { %516 = vmatprep.mubr.bf16.mxu0 %v1476_v36 }
 0x18f   :  { %517 = vmatmul.mubr.bf16.gmra.mxu0 %v314_v48 }
 0x190   :  { %526 = vmatprep.mubr.bf16.mxu0 %v1476_v36  ;;  %v1262_v36 = vld [vmem:[#allocation7 + $0x20] sm:$0xff]  }
 0x191   :  { %1165 = vmatpush3.bf16.msra.mxu1 %v1262_v36 }
 0x192   :  { %1166 = vmatprep.subr.bf16.mxu1 %v1263_v58 }
 0x195   :  { %1167 = vmatpush3.bf16.msra.mxu1 %v1264_v20 }
 0x196   :  { %1168 = vmatprep.subr.bf16.mxu1 %v1265_v37 }
 0x197   :  { %527 = vmatmul.mubr.bf16.gmra.mxu0 %v315_v52 }
 0x199   :  { %1169 = vmatpush3.bf16.msra.mxu1 %v1266_v59 }
 0x19a   :  { %1170 = vmatprep.subr.bf16.mxu1 %v1267_v60 }
 0x19d   :  { %1171 = vmatpush3.bf16.msra.mxu1 %v1268_v61 }
 0x19e   :  { %1172 = vmatprep.subr.bf16.mxu1 %v1269_v62 }
 0x1a1   :  { %1173 = vmatpush3.bf16.msra.mxu1 %v1270_v63 }
 0x21f   :  { %v458_v46 = vpop.f32.mrf.mxu0 }
 0x220   :  { %v1703_v16 = vadd.f32 %v458_v46, %v1698_v8 }
 0x221   :  { %v460_v45 = vpop.f32.mrf.mxu0 }
 0x222   :  { %v569_v17 = vmul.f32 0.044715, %v1703_v16  ;;  %v1707_v18 = vadd.f32 %v460_v45, %v1700_v9 }
 0x223   :  { %v462_v19 = vpop.f32.mrf.mxu0 }
 0x224   :  { %v601_v22 = vmul.f32 %v569_v17, %v1703_v16  ;;  %v570_v21 = vmul.f32 0.044715, %v1707_v18  ;;  %v1712_v24 = vadd.f32 %v462_v19, %v1698_v8 }
 0x225   :  { %v464_v12 = vpop.f32.mrf.mxu0 }
 0x226   :  { %v633_v26 = vmul.f32 %v601_v22, %v1703_v16  ;;  %v571_v27 = vmul.f32 0.044715, %v1712_v24  ;;  %v1717_v29 = vadd.f32 %v464_v12, %v1700_v9  ;;  %v602_v56 = vmul.f32 %v570_v21, %v1707_v18 }
 0x227   :  { %v468_v28 = vpop.f32.mrf.mxu0 }
 0x228   :  { %v603_v55 = vmul.f32 %v571_v27, %v1712_v24  ;;  %v572_v31 = vmul.f32 0.044715, %v1717_v29  ;;  %v1723_v14 = vadd.f32 %v468_v28, %v1698_v8  ;;  %v634_v15 = vmul.f32 %v602_v56, %v1707_v18 }
 0x229   :  { %v470_v32 = vpop.f32.mrf.mxu0  ;;  %v665_v33 = vadd.f32 %v633_v26, %v1703_v16 }
 0x22a   :  { %v635_v34 = vmul.f32 %v603_v55, %v1712_v24  ;;  %v573_v35 = vmul.f32 0.044715, %v1723_v14  ;;  %v1730_v39 = vadd.f32 %v470_v32, %v1700_v9  ;;  %v604_v1 = vmul.f32 %v572_v31, %v1717_v29 }
 0x22b   :  { %v472_v40 = vpop.f32.mrf.mxu0  ;;  %v666_v41 = vadd.f32 %v634_v15, %v1707_v18  ;;  %v697_v0 = vmul.f32 0.7978846, %v665_v33  ;;  %v538_v31 = vmul.f32 0.5, %v1707_v18  ;;  %v537_v32 = vmul.f32 0.5, %v1703_v16 }
 0x22c   :  { %v605_v23 = vmul.f32 %v573_v35, %v1723_v14  ;;  %v574_v30 = vmul.f32 0.044715, %v1730_v39  ;;  %v1737_v42 = vadd.f32 %v472_v40, %v1698_v8  ;;  %v636_v43 = vmul.f32 %v604_v1, %v1717_v29 }
 0x22d   :  { %v474_v44 = vpop.f32.mrf.mxu0  ;;  %v698_v11 = vmul.f32 0.7978846, %v666_v41  ;;  %v667_v47 = vadd.f32 %v635_v34, %v1712_v24  ;;  %1303 = vtanh.f32 %v697_v0  ;;  %v539_v40 = vmul.f32 0.5, %v1712_v24 }
 0x22e   :  { %v637_v48 = vmul.f32 %v605_v23, %v1723_v14  ;;  %v606_v10 = vmul.f32 %v574_v30, %v1730_v39  ;;  %v575_v49 = vmul.f32 0.044715, %v1737_v42  ;;  %v1745_v50 = vadd.f32 %v474_v44, %v1700_v9 }
 0x22f   :  { %v478_v51 = vpop.f32.mrf.mxu0  ;;  %v668_v52 = vadd.f32 %v636_v43, %v1717_v29  ;;  %1305 = vtanh.f32 %v698_v11  ;;  %v699_v53 = vmul.f32 0.7978846, %v667_v47  ;;  %v540_v18 = vmul.f32 0.5, %v1717_v29 }
 0x230   :  { %v638_v13 = vmul.f32 %v606_v10, %v1730_v39  ;;  %v607_v54 = vmul.f32 %v575_v49, %v1737_v42  ;;  %v576_v25 = vmul.f32 0.044715, %v1745_v50  ;;  %v1752_v57 = vadd.f32 %v478_v51, %v1698_v8 }
 0x231   :  { %v480_v38 = vpop.f32.mrf.mxu0  ;;  %v700_v5 = vmul.f32 0.7978846, %v668_v52  ;;  %1307 = vtanh.f32 %v699_v53  ;;  %v669_v36 = vadd.f32 %v637_v48, %v1723_v14  ;;  %v1794_v43 = vmul.f32 0.5, %v1730_v39 }
 0x232   :  { %v639_v58 = vmul.f32 %v607_v54, %v1737_v42  ;;  %v608_v20 = vmul.f32 %v576_v25, %v1745_v50  ;;  %v577_v37 = vmul.f32 0.044715, %v1752_v57  ;;  %v1759_v59 = vadd.f32 %v480_v38, %v1700_v9 }
 0x233   :  { %v482_v60 = vpop.f32.mrf.mxu0  ;;  %1309 = vtanh.f32 %v700_v5  ;;  %v670_v61 = vadd.f32 %v638_v13, %v1730_v39  ;;  %v701_v62 = vmul.f32 0.7978846, %v669_v36  ;;  %v1797_v44 = vmul.f32 0.5, %v1723_v14 }
 0x234   :  { %v640_v63 = vmul.f32 %v608_v20, %v1745_v50  ;;  %v609_v2 = vmul.f32 %v577_v37, %v1752_v57  ;;  %v578_v3 = vmul.f32 0.044715, %v1759_v59  ;;  %v1766_v4 = vadd.f32 %v482_v60, %v1698_v8 }
 0x235   :  { %v484_v6 = vpop.f32.mrf.mxu0  ;;  %v702_v7 = vmul.f32 0.7978846, %v670_v61  ;;  %v671_v46 = vadd.f32 %v639_v58, %v1737_v42  ;;  %1311 = vtanh.f32 %v701_v62  ;;  %v1805_v48 = vmul.f32 0.5, %v1737_v42 }
 0x236   :  { %v610_v45 = vmul.f32 %v578_v3, %v1759_v59  ;;  %v579_v17 = vmul.f32 0.044715, %v1766_v4  ;;  %v1772_v19 = vadd.f32 %v484_v6, %v1700_v9  ;;  %v672_v21 = vadd.f32 %v640_v63, %v1745_v50 }
 0x237   :  { %v488_v22 = vpop.f32.mrf.mxu0  ;;  %1313 = vtanh.f32 %v702_v7  ;;  %v703_v12 = vmul.f32 0.7978846, %v671_v46  ;;  %v641_v26 = vmul.f32 %v609_v2, %v1752_v57  ;;  %v1812_v52 = vmul.f32 0.5, %v1745_v50 }
 0x238   :  { %v642_v27 = vmul.f32 %v610_v45, %v1759_v59  ;;  %v611_v56 = vmul.f32 %v579_v17, %v1766_v4  ;;  %v580_v28 = vmul.f32 0.044715, %v1772_v19  ;;  %v704_v15 = vmul.f32 0.7978846, %v672_v21 }
 0x239   :  { %v490_v55 = vpop.f32.mrf.mxu0  ;;  %1315 = vtanh.f32 %v703_v12  ;;  %v1783_v35 = vadd.f32 %v488_v22, %v1698_v8  ;;  %v673_v11 = vadd.f32 %v641_v26, %v1752_v57  ;;  %v1818_v36 = vmul.f32 0.5, %v1752_v57 }
 0x23a   :  { %v1304_v33 = vpop.eup %1303  ;;  %v612_v34 = vmul.f32 %v580_v28, %v1772_v19  ;;  %v1786_v1 = vadd.f32 %v490_v55, %v1700_v9  ;;  %v643_v41 = vmul.f32 %v611_v56, %v1766_v4  ;;  %1317 = vtanh.f32 %v704_v15 }
 0x23b   :  { %v492_v0 = vpop.f32.mrf.mxu0  ;;  %v674_v16 = vadd.f32 %v642_v27, %v1759_v59  ;;  %v581_v51 = vmul.f32 0.044715, %v1783_v35  ;;  %v761_v5 = vadd.f32 1.0, %v1304_v33  ;;  %v705_v58 = vmul.f32 0.7978846, %v673_v11 }
 0x23c   :  { %v1306_v23 = vpop.eup %1305  ;;  %v644_v30 = vmul.f32 %v612_v34, %v1772_v19  ;;  %v582_v24 = vmul.f32 0.044715, %v1786_v1  ;;  %v1802_v47 = vadd.f32 %v492_v0, %v1698_v8  ;;  %v675_v25 = vadd.f32 %v643_v41, %v1766_v4 }
 0x23d   :  { %v494_v29 = vpop.f32.mrf.mxu0  ;;  %v706_v10 = vmul.f32 0.7978846, %v674_v16  ;;  %v762_v14 = vadd.f32 1.0, %v1306_v23  ;;  %v1826_v3 = vmul.f32 0.5, %v1759_v59  ;;  %v613_v22 = vmul.f32 %v581_v51, %v1783_v35 }
 0x23e   :  { %v1308_v49 = vpop.eup %1307  ;;  %v1809_v39 = vadd.f32 %v494_v29, %v1700_v9  ;;  %v676_v54 = vadd.f32 %v644_v30, %v1772_v19  ;;  %v614_v20 = vmul.f32 %v582_v24, %v1786_v1  ;;  %v583_v50 = vmul.f32 0.044715, %v1802_v47 }
 0x23f   :  { %v498_v53 = vpop.f32.mrf.mxu0  ;;  %v763_v13 = vadd.f32 1.0, %v1308_v49  ;;  %1319 = vtanh.f32 %v706_v10  ;;  %v794_v63 = vmul.f32 %v762_v14, %v538_v31  ;;  %v707_v45 = vmul.f32 0.7978846, %v675_v25 }
 0x240   :  { %v1310_v42 = vpop.eup %1309  ;;  %v584_v38 = vmul.f32 0.044715, %v1809_v39  ;;  %v708_v61 = vmul.f32 0.7978846, %v676_v54  ;;  %v1823_v62 = vadd.f32 %v498_v53, %v1698_v8  ;;  %v793_v26 = vmul.f32 %v761_v5, %v537_v32 }
 0x241   :  { %v500_v37 = vpop.f32.mrf.mxu0  ;;  %v764_v60 = vadd.f32 1.0, %v1310_v42  ;;  %v795_v2 = vmul.f32 %v763_v13, %v539_v40  ;;  %v646_v59 = vmul.f32 %v614_v20, %v1786_v1  ;;  %v615_v27 = vmul.f32 %v583_v50, %v1802_v47 }
 0x242   :  { %v1312_v6 = vpop.eup %1311  ;;  %v616_v57 = vmul.f32 %v584_v38, %v1809_v39  ;;  %1321 = vtanh.f32 %v708_v61  ;;  %v1831_v21 = vadd.f32 %v500_v37, %v1700_v9  ;;  %v585_v31 = vmul.f32 0.044715, %v1823_v62 }
 0x243   :  { %v502_v7 = vpop.f32.mrf.mxu0  ;;  %v796_v46 = vmul.f32 %v764_v60, %v540_v18  ;;  %1323 = vtanh.f32 %v705_v58  ;;  %v825_v33 = vpack.c.bf16 %v795_v2, %v793_v26  ;;  %v765_v34 = vadd.f32 1.0, %v1312_v6 }
 0x244   :  { %v1314_v17 = vpop.eup %1313  ;;  %v1834_v12 = vadd.f32 %v502_v7, %v1698_v8  ;;  %v648_v40 = vmul.f32 %v616_v57, %v1809_v39  ;;  %1325 = vtanh.f32 %v707_v45  ;;  %v586_v16 = vmul.f32 0.044715, %v1831_v21 }
 0x245   :  { %v504_v56 = vpop.f32.mrf.mxu0  ;;  %v826_v28 = vpack.c.bf16 %v796_v46, %v794_v63  ;;  %v766_v32 = vadd.f32 1.0, %v1314_v17  ;;  %v1849_v11 = vmul.f32 0.5, %v1766_v4  ;;  %v645_v24 = vmul.f32 %v613_v22, %v1783_v35 }
 0x246   :  { %v1316_v55 = vpop.eup %1315  ;;  %v1840_v15 = vadd.f32 %v504_v56, %v1700_v9  ;;  %v587_v23 = vmul.f32 0.044715, %v1834_v12  ;;  %v678_v51 = vadd.f32 %v646_v59, %v1786_v1  ;;  %v647_v14 = vmul.f32 %v615_v27, %v1802_v47 }
 0x247   :  { %1008 = vmatprep.mubr.bf16.mxu1 %v826_v28  ;;  %v508_v41 = vpop.f32.mrf.mxu0  ;;  %v767_v0 = vadd.f32 1.0, %v1316_v55  ;;  %v1318_v18 = vpop.eup %1317  ;;  %v617_v53 = vmul.f32 %v585_v31, %v1823_v62  ;;  %v797_v13 = vmul.f32 %v765_v34, %v1797_v44  ;;  %v798_v4 = vmul.f32 %v766_v32, %v1794_v43 }
 0x248   :  { %v1846_v30 = vadd.f32 %v508_v41, %v1698_v8  ;;  %1009 = vmatmul.mubr.bf16.vlgmr.msra.gmra.mxu1 %v825_v33  ;;  %v588_v29 = vmul.f32 0.044715, %v1840_v15  ;;  %v768_v49 = vadd.f32 1.0, %v1318_v18  ;;  %v680_v38 = vadd.f32 %v648_v40, %v1809_v39 }
 0x249   :  { %v510_v10 = vpop.f32.mrf.mxu0  ;;  %v799_v54 = vmul.f32 %v767_v0, %v1805_v48  ;;  %v710_v5 = vmul.f32 0.7978846, %v678_v51  ;;  %v618_v20 = vmul.f32 %v586_v16, %v1831_v21  ;;  %v619_v50 = vmul.f32 %v587_v23, %v1834_v12 }
 0x24a   :  { %v800_v42 = vmul.f32 %v768_v49, %v1812_v52  ;;  %v589_v37 = vmul.f32 0.044715, %v1846_v30  ;;  %v1865_v60 = vadd.f32 %v510_v10, %v1700_v9  ;;  %v620_v44 = vmul.f32 %v588_v29, %v1840_v15 }
 0x24b   :  { %v512_v25 = vpop.f32.mrf.mxu0  ;;  %v712_v43 = vmul.f32 0.7978846, %v680_v38  ;;  %1327 = vtanh.f32 %v710_v5  ;;  %v827_v2 = vpack.c.bf16 %v799_v54, %v797_v13  ;;  %v1875_v57 = vmul.f32 %v617_v53, %v1823_v62 }
 0x24c   :  { %v1320_v58 = vpop.eup %1319  ;;  %v828_v61 = vpack.c.bf16 %v800_v42, %v798_v4  ;;  %v1869_v52 = vadd.f32 %v512_v25, %v1698_v8  ;;  %v548_v46 = vmul.f32 0.5, %v1772_v19  ;;  %v1879_v45 = vmul.f32 0.5, %v1786_v1 }
 0x24d   :  { %v514_v48 = vpop.f32.mrf.mxu0  ;;  %v770_v6 = vadd.f32 1.0, %v1320_v58  ;;  %1329 = vtanh.f32 %v712_v43  ;;  %v650_v22 = vmul.f32 %v618_v20, %v1831_v21  ;;  %v621_v26 = vmul.f32 %v589_v37, %v1846_v30 }
 0x24e   :  { %v1872_v63 = vadd.f32 %v514_v48, %v1700_v9  ;;  %1016 = vmatprep.mubr.bf16.mxu1 %v828_v61  ;;  %v590_v59 = vmul.f32 0.044715, %v1865_v60  ;;  %v1885_v27 = vmul.f32 0.5, %v1809_v39  ;;  %v1888_v56 = vmul.f32 %v619_v50, %v1834_v12 }
 0x24f   :  { %v518_v7 = vpop.f32.mrf.mxu0  ;;  %v1322_v17 = vpop.eup %1321  ;;  %v677_v1 = vadd.f32 %v645_v24, %v1783_v35  ;;  %v679_v55 = vadd.f32 %v647_v14, %v1802_v47  ;;  %v652_v33 = vmul.f32 %v620_v44, %v1840_v15  ;;  %v591_v34 = vmul.f32 0.044715, %v1869_v52 }
 0x250   :  { %1017 = vmatmul.mubr.bf16.gmra.mxu1 %v827_v2  ;;  %v772_v19 = vadd.f32 1.0, %v1322_v17  ;;  %v1324_v31 = vpop.eup %1323  ;;  %v592_v40 = vmul.f32 0.044715, %v1872_v63  ;;  %v802_v41 = vmul.f32 %v770_v6, %v1826_v3  ;;  %v1897_v29 = vmul.f32 %v621_v26, %v1846_v30 }
 0x251   :  { %v520_v28 = vpop.f32.mrf.mxu0  ;;  %v769_v0 = vadd.f32 1.0, %v1324_v31  ;;  %v709_v18 = vmul.f32 0.7978846, %v677_v1  ;;  %v711_v16 = vmul.f32 0.7978846, %v679_v55  ;;  %v1326_v23 = vpop.eup %1325  ;;  %v622_v24 = vmul.f32 %v590_v59, %v1865_v60 }
 0x252   :  { %v804_v32 = vmul.f32 %v772_v19, %v548_v46  ;;  %v1901_v10 = vadd.f32 %v518_v7, %v1698_v8  ;;  %v1904_v49 = vmul.f32 0.5, %v1783_v35  ;;  %v1907_v51 = vadd.f32 %v520_v28, %v1700_v9 }
 0x253   :  { %v522_v39 = vpop.f32.mrf.mxu0  ;;  %v771_v53 = vadd.f32 1.0, %v1326_v23  ;;  %1331 = vtanh.f32 %v709_v18  ;;  %v623_v13 = vmul.f32 %v591_v34, %v1869_v52  ;;  %v624_v54 = vmul.f32 %v592_v40, %v1872_v63 }
 0x254   :  { %v830_v14 = vpack.c.bf16 %v804_v32, %v802_v41  ;;  %v1912_v25 = vadd.f32 %v522_v39, %v1698_v8  ;;  %v801_v42 = vmul.f32 %v769_v0, %v1818_v36  ;;  %1333 = vtanh.f32 %v711_v16 }
 0x255   :  { %v524_v3 = vpop.f32.mrf.mxu0  ;;  %v803_v38 = vmul.f32 %v771_v53, %v1849_v11  ;;  %v682_v5 = vadd.f32 %v650_v22, %v1831_v21  ;;  %v654_v58 = vmul.f32 %v622_v24, %v1865_v60  ;;  %v593_v20 = vmul.f32 0.044715, %v1901_v10 }
 0x256   :  { %v1915_v4 = vadd.f32 %v524_v3, %v1700_v9  ;;  %1024 = vmatprep.mubr.bf16.mxu1 %v830_v14  ;;  %v1923_v50 = vmul.f32 0.5, %v1802_v47  ;;  %v1926_v37 = vmul.f32 0.5, %v1831_v21  ;;  %v594_v44 = vmul.f32 0.044715, %v1907_v51 }
 0x257   :  { %v528_v35 = vpop.f32.mrf.mxu0  ;;  %v829_v48 = vpack.c.bf16 %v803_v38, %v801_v42  ;;  %v684_v36 = vadd.f32 %v652_v33, %v1840_v15  ;;  %v714_v11 = vmul.f32 0.7978846, %v682_v5  ;;  %v655_v2 = vmul.f32 %v623_v13, %v1869_v52 }
 0x258   :  { %v1328_v43 = vpop.eup %1327  ;;  %v595_v6 = vmul.f32 0.044715, %v1912_v25  ;;  %v596_v7 = vmul.f32 0.044715, %v1915_v4  ;;  %v656_v21 = vmul.f32 %v624_v54, %v1872_v63  ;;  %v625_v59 = vmul.f32 %v593_v20, %v1901_v10 }
 0x259   :  { %v530_v61 = vpop.f32.mrf.mxu0  ;;  %1025 = vmatmul.mubr.bf16.gmra.mxu1 %v829_v48  ;;  %v774_v17 = vadd.f32 1.0, %v1328_v43  ;;  %v716_v22 = vmul.f32 0.7978846, %v684_v36  ;;  %1335 = vtanh.f32 %v714_v11  ;;  %v1939_v28 = vadd.f32 %v528_v35, %v1698_v8 }
 0x25a   :  { %v1934_v47 = vadd.f32 %v530_v61, %v1700_v9  ;;  %v1330_v26 = vpop.eup %1329  ;;  %v626_v55 = vmul.f32 %v594_v44, %v1907_v51  ;;  %v681_v34 = vadd.f32 %v1875_v57, %v1823_v62  ;;  %v627_v40 = vmul.f32 %v595_v6, %v1912_v25 }
 0x25b   :  { %v532_v46 = vpop.f32.mrf.mxu0  ;;  %v776_v33 = vadd.f32 1.0, %v1330_v26  ;;  %1337 = vtanh.f32 %v716_v22  ;;  %v628_v41 = vmul.f32 %v596_v7, %v1915_v4  ;;  %v683_v18 = vadd.f32 %v1888_v56, %v1834_v12 }
 0x25c   :  { %v598_v19 = vmul.f32 0.044715, %v1934_v47  ;;  %v1943_v1 = vadd.f32 %v532_v46, %v1698_v8  ;;  %v806_v8 = vmul.f32 %v774_v17, %v1879_v45  ;;  %v713_v16 = vmul.f32 0.7978846, %v681_v34 }
 0x25d   :  { %v534_v31 = vpop.f32.mrf.mxu0  ;;  %v808_v0 = vmul.f32 %v776_v33, %v1885_v27  ;;  %v657_v23 = vmul.f32 %v625_v59, %v1901_v10  ;;  %v597_v57 = vmul.f32 0.044715, %v1939_v28  ;;  %v715_v53 = vmul.f32 0.7978846, %v683_v18 }
 0x25e   :  { %v599_v39 = vmul.f32 0.044715, %v1943_v1  ;;  %v1952_v32 = vadd.f32 %v534_v31, %v1700_v9  ;;  %v630_v24 = vmul.f32 %v598_v19, %v1934_v47  ;;  %1339 = vtanh.f32 %v713_v16 }
 0x25f   :  { %v832_v14 = vpack.c.bf16 %v808_v0, %v806_v8  ;;  %v686_v9 = vadd.f32 %v654_v58, %v1865_v60  ;;  %v658_v27 = vmul.f32 %v626_v55, %v1907_v51  ;;  %v659_v13 = vmul.f32 %v627_v40, %v1912_v25 }
 0x260   :  { %v600_v3 = vmul.f32 0.044715, %v1952_v32  ;;  %v1332_v45 = vpop.eup %1331  ;;  %v631_v56 = vmul.f32 %v599_v39, %v1943_v1  ;;  %v688_v54 = vadd.f32 %v656_v21, %v1872_v63  ;;  %v660_v35 = vmul.f32 %v628_v41, %v1915_v4 }
 0x261   :  { %1032 = vmatprep.mubr.bf16.mxu1 %v832_v14  ;;  %v773_v42 = vadd.f32 1.0, %v1332_v45  ;;  %1341 = vtanh.f32 %v715_v53  ;;  %v718_v38 = vmul.f32 0.7978846, %v686_v9  ;;  %v1334_v5 = vpop.eup %1333  ;;  %v685_v58 = vadd.f32 %v1897_v29, %v1846_v30 }
 0x262   :  { %v632_v20 = vmul.f32 %v600_v3, %v1952_v32  ;;  %v720_v44 = vmul.f32 0.7978846, %v688_v54  ;;  %v687_v48 = vadd.f32 %v655_v2, %v1869_v52  ;;  %v629_v61 = vmul.f32 %v597_v57, %v1939_v28 }
 0x263   :  { %v662_v36 = vmul.f32 %v630_v24, %v1934_v47  ;;  %v775_v11 = vadd.f32 1.0, %v1334_v5  ;;  %1343 = vtanh.f32 %v718_v38  ;;  %v663_v43 = vmul.f32 %v631_v56, %v1943_v1 }
 0x264   :  { %1345 = vtanh.f32 %v720_v44  ;;  %v717_v6 = vmul.f32 0.7978846, %v685_v58  ;;  %v719_v7 = vmul.f32 0.7978846, %v687_v48  ;;  %v805_v21 = vmul.f32 %v773_v42, %v1904_v49 }
 0x265   :  { %v807_v46 = vmul.f32 %v775_v11, %v1923_v50  ;;  %v690_v17 = vadd.f32 %v658_v27, %v1907_v51  ;;  %v692_v29 = vadd.f32 %v660_v35, %v1915_v4  ;;  %v664_v22 = vmul.f32 %v632_v20, %v1952_v32 }
 0x266   :  { %v1336_v2 = vpop.eup %1335  ;;  %1347 = vtanh.f32 %v717_v6  ;;  %v689_v26 = vadd.f32 %v657_v23, %v1901_v10  ;;  %v691_v59 = vadd.f32 %v659_v13, %v1912_v25  ;;  %v694_v40 = vadd.f32 %v662_v36, %v1934_v47 }
 0x267   :  { %v831_v19 = vpack.c.bf16 %v807_v46, %v805_v21  ;;  %v778_v55 = vadd.f32 1.0, %v1336_v2  ;;  %1349 = vtanh.f32 %v719_v7  ;;  %v722_v31 = vmul.f32 0.7978846, %v690_v17 }
 0x268   :  { %v1338_v33 = vpop.eup %1337  ;;  %v724_v49 = vmul.f32 0.7978846, %v692_v29  ;;  %v721_v34 = vmul.f32 0.7978846, %v689_v26  ;;  %v723_v50 = vmul.f32 0.7978846, %v691_v59  ;;  %v661_v41 = vmul.f32 %v629_v61, %v1939_v28 }
 0x269   :  { %1033 = vmatmul.mubr.bf16.gmra.mxu1 %v831_v19  ;;  %v556_v39 = vmul.f32 0.5, %v1840_v15  ;;  %v780_v8 = vadd.f32 1.0, %v1338_v33  ;;  %1351 = vtanh.f32 %v722_v31  ;;  %v696_v0 = vadd.f32 %v664_v22, %v1952_v32 }
 0x26a   :  { %1353 = vtanh.f32 %v724_v49  ;;  %v726_v18 = vmul.f32 0.7978846, %v694_v40  ;;  %v810_v16 = vmul.f32 %v778_v55, %v1926_v37  ;;  %v695_v3 = vadd.f32 %v663_v43, %v1943_v1 }
 0x26b   :  { %v812_v23 = vmul.f32 %v780_v8, %v556_v39  ;;  %1355 = vtanh.f32 %v721_v34  ;;  %v1340_v57 = vpop.eup %1339  ;;  %v728_v24 = vmul.f32 0.7978846, %v696_v0  ;;  %v693_v15 = vadd.f32 %v661_v41, %v1939_v28 }
 0x26c   :  { %1357 = vtanh.f32 %v723_v50  ;;  %v777_v53 = vadd.f32 1.0, %v1340_v57  ;;  %v553_v45 = vmul.f32 0.5, %v1823_v62  ;;  %v555_v27 = vmul.f32 0.5, %v1834_v12 }
 0x26d   :  { %v834_v14 = vpack.c.bf16 %v812_v23, %v810_v16  ;;  %1359 = vtanh.f32 %v726_v18  ;;  %v727_v13 = vmul.f32 0.7978846, %v695_v3  ;;  %v725_v5 = vmul.f32 0.7978846, %v693_v15 }
 0x26e   :  { %v1342_v9 = vpop.eup %1341  ;;  %1361 = vtanh.f32 %v728_v24  ;;  %v809_v35 = vmul.f32 %v777_v53, %v553_v45  ;;  %v558_v20 = vmul.f32 0.5, %v1865_v60  ;;  %v560_v44 = vmul.f32 0.5, %v1872_v63 }
 0x26f   :  { %1040 = vmatprep.mubr.bf16.mxu1 %v834_v14  ;;  %v779_v37 = vadd.f32 1.0, %v1342_v9  ;;  %1363 = vtanh.f32 %v727_v13  ;;  %v559_v12 = vmul.f32 0.5, %v1869_v52  ;;  %v557_v60 = vmul.f32 0.5, %v1846_v30 }
 0x270   :  { %v1344_v56 = vpop.eup %1343  ;;  %1365 = vtanh.f32 %v725_v5  ;;  %v562_v2 = vmul.f32 0.5, %v1907_v51  ;;  %v564_v22 = vmul.f32 0.5, %v1915_v4  ;;  %v568_v30 = vmul.f32 0.5, %v1952_v32 }
 0x271   :  { %v1346_v54 = vpop.eup %1345  ;;  %v811_v42 = vmul.f32 %v779_v37, %v555_v27  ;;  %v782_v38 = vadd.f32 1.0, %v1344_v56  ;;  %v563_v39 = vmul.f32 0.5, %v1912_v25  ;;  %v566_v4 = vmul.f32 0.5, %v1934_v47  ;;  %v2006_v27 = vld [vmem:[%s2036_s6] ss:$0 sm:$0xff]  ;;  %s1477_s6 = smov [#allocation8]  }
 0x272   :  { %v784_v58 = vadd.f32 1.0, %v1346_v54  ;;  %v561_v0 = vmul.f32 0.5, %v1901_v10  ;;  %v567_v53 = vmul.f32 0.5, %v1943_v1  ;;  %v565_v25 = vmul.f32 0.5, %v1939_v28  ;;  %s1110_s22 = sshll.u32 %s1477_s6, 4  ;;  %s1111_s22 = int_to_ptr.vmem [resolvable:$true] %s1110_s22 }
 0x273   :  { %v1348_v48 = vpop.eup %1347  ;;  %v833_v61 = vpack.c.bf16 %v811_v42, %v809_v35  ;;  %v814_v62 = vmul.f32 %v782_v38, %v558_v20  ;;  %v1367_v35 = vld [vmem:[#allocation2] sm:$0xff]  ;;  %s1443_s23 = scalar_lea.vmem %s1111_s22, 2048  ;;  %p1448_p2 = scmp.lt.s32.totalorder %s1111_s22, %s1111_s22 }
 0x274   :  { %v1350_v36 = vpop.eup %1349  ;;  %v816_v11 = vmul.f32 %v784_v58, %v560_v44  ;;  %v781_v43 = vadd.f32 1.0, %v1348_v48  ;;  %v1368_v44 = vld [vmem:[#allocation2 + $0x8] sm:$0xff]  ;;  %p1444_p1 = scmp.ne.s32.totalorder %s1111_s22, %s1443_s23  ;;  %p1449_p3 = scmp.lt.s32.totalorder %s1443_s23, %s1443_s23 }
 0x275   :  { %1041 = vmatmul.mubr.bf16.gmra.mxu1 %v833_v61  ;;  %v783_v6 = vadd.f32 1.0, %v1350_v36 }
 0x276   :  { %v1352_v7 = vpop.eup %1351  ;;  %v836_v21 = vpack.c.bf16 %v816_v11, %v814_v62  ;;  %v813_v19 = vmul.f32 %v781_v43, %v557_v60  ;;  %v1369_v11 = vld [vmem:[#allocation2 + $0x10] sm:$0xff]  ;;  %p1450_p4 = por %p1449_p3, %p1448_p2 }
 0x277   :  { %v1354_v46 = vpop.eup %1353  ;;  %v815_v17 = vmul.f32 %v783_v6, %v559_v12  ;;  %v786_v63 = vadd.f32 1.0, %v1352_v7  ;;  %v1370_v7 = vld [vmem:[#allocation2 + $0x18] sm:$0xff] }
 0x278   :  { %v1356_v29 = vpop.eup %1355  ;;  %1048 = vmatprep.mubr.bf16.mxu1 %v836_v21  ;;  %v788_v26 = vadd.f32 1.0, %v1354_v46  ;;  %p1451_p5 = pnand %p1450_p4, %p1444_p1 }
 0x279   :  { %v1358_v59 = vpop.eup %1357  ;;  %v818_v55 = vmul.f32 %v786_v63, %v562_v2  ;;  %v835_v49 = vpack.c.bf16 %v815_v17, %v813_v19  ;;  %v785_v51 = vadd.f32 1.0, %v1356_v29 }
 0x27a   :  { %v1360_v52 = vpop.eup %1359  ;;  %v820_v31 = vmul.f32 %v788_v26, %v564_v22  ;;  %v787_v34 = vadd.f32 1.0, %v1358_v59  ;;  %v1371_v22 = vld [vmem:[#allocation2 + $0x20] sm:$0xff] }
 0x27b   :  { %v1362_v33 = vpop.eup %1361  ;;  %v790_v40 = vadd.f32 1.0, %v1360_v52  ;;  %v817_v57 = vmul.f32 %v785_v51, %v561_v0  ;;  %v1372_v52 = vld [vmem:[#allocation2 + $0x28] sm:$0xff] }
 0x27c   :  { %v838_v50 = vpack.c.bf16 %v820_v31, %v818_v55  ;;  %v792_v41 = vadd.f32 1.0, %v1362_v33  ;;  %v819_v18 = vmul.f32 %v787_v34, %v563_v39  ;;  %v1364_v16 = vpop.eup %1363 }
 0x27d   :  { %1049 = vmatmul.mubr.bf16.gmra.mxu1 %v835_v49  ;;  %v822_v23 = vmul.f32 %v790_v40, %v566_v4  ;;  %v1366_v24 = vpop.eup %1365  ;;  %v791_v32 = vadd.f32 1.0, %v1364_v16  ;;  %v1373_v40 = vld [vmem:[#allocation2 + $0x30] sm:$0xff]  ;;  %v1374_v4 = vld [vmem:[#allocation2 + $0x38] sm:$0xff] }
 0x27e   :  { %1056 = vmatprep.mubr.bf16.mxu1 %v838_v50  ;;  %v824_v8 = vmul.f32 %v792_v41, %v568_v30  ;;  %v837_v14 = vpack.c.bf16 %v819_v18, %v817_v57  ;;  %v789_v15 = vadd.f32 1.0, %v1366_v24 }
 0x27f   :  { %v823_v9 = vmul.f32 %v791_v32, %v567_v53 }
 0x280   :  { %v840_v3 = vpack.c.bf16 %v824_v8, %v822_v23  ;;  %v821_v47 = vmul.f32 %v789_v15, %v565_v25 }
 0x282   :  { %v839_v45 = vpack.c.bf16 %v823_v9, %v821_v47  ;;  %v1376_v9 = vld [vmem:[#allocation2 + $0x48] sm:$0xff] }
 0x285   :  { %1057 = vmatmul.mubr.bf16.gmra.mxu1 %v837_v14 }
 0x286   :  { %1064 = vmatprep.mubr.bf16.mxu1 %v840_v3  ;;  %v1375_v3 = vld [vmem:[#allocation2 + $0x40] sm:$0xff] }
 0x28d   :  { %1065 = vmatmul.mubr.bf16.gmra.mxu1 %v839_v45 }
 0x308   :  { %v1174_v10 = vpop.f32.mrf.mxu1 }
 0x30a   :  { %v1175_v37 = vpop.f32.mrf.mxu1 }
 0x30b   :  { %v1176_v13 = vadd.f32 %v1175_v37, %v1174_v10 }
 0x30c   :  { %v1177_v56 = vpop.f32.mrf.mxu1 }
 0x30d   :  { %v1011_v54 = vadd.f32 %v1176_v13, %v2006_v27 }
 0x30e   :  { %v1178_v1 = vpop.f32.mrf.mxu1 }
 0x30f   :  { %v1073_v42 = vadd.f32 %v1367_v35, %v1011_v54  ;;  %v1179_v38 = vadd.f32 %v1178_v1, %v1177_v56  ;;  %v1377_v56 = vld [vmem:[#allocation2 + $0x50] sm:$0xff] }
 0x310   :  { %v1180_v28 = vpop.f32.mrf.mxu1 }
 0x311   :  { %1089 = vst [vmem:[#allocation8] sm:$0xff] %v1073_v42  ;;  %v1014_v5 = vadd.f32 %v1179_v38, %v2006_v27 }
 0x312   :  { %v1181_v20 = vpop.f32.mrf.mxu1 }
 0x313   :  { %v1074_v58 = vadd.f32 %v1368_v44, %v1014_v5  ;;  %v1182_v48 = vadd.f32 %v1181_v20, %v1180_v28  ;;  %v1378_v28 = vld [vmem:[#allocation2 + $0x58] sm:$0xff] }
 0x314   :  { %v1183_v61 = vpop.f32.mrf.mxu1 }
 0x315   :  { %1090 = vst [vmem:[#allocation8 + $0x8] sm:$0xff] %v1074_v58  ;;  %v1019_v36 = vadd.f32 %v1182_v48, %v2006_v27 }
 0x316   :  { %v1184_v62 = vpop.f32.mrf.mxu1 }
 0x317   :  { %v1075_v12 = vadd.f32 %v1369_v11, %v1019_v36  ;;  %v1185_v43 = vadd.f32 %v1184_v62, %v1183_v61  ;;  %v1379_v61 = vld [vmem:[#allocation2 + $0x60] sm:$0xff] }
 0x319   :  { %1091 = vst [vmem:[#allocation8 + $0x10] sm:$0xff] %v1075_v12  ;;  %v1022_v6 = vadd.f32 %v1185_v43, %v2006_v27  ;;  %v1186_v46 = vpop.f32.mrf.mxu1 }
 0x31b   :  { %v1076_v21 = vadd.f32 %v1370_v7, %v1022_v6  ;;  %v1187_v60 = vpop.f32.mrf.mxu1  ;;  %v1380_v6 = vld [vmem:[#allocation2 + $0x68] sm:$0xff] }
 0x31c   :  { %v1188_v17 = vadd.f32 %v1187_v60, %v1186_v46 }
 0x31d   :  { %1092 = vst [vmem:[#allocation8 + $0x18] sm:$0xff] %v1076_v21  ;;  %v1189_v63 = vpop.f32.mrf.mxu1 }
 0x31e   :  { %v1027_v29 = vadd.f32 %v1188_v17, %v2006_v27 }
 0x31f   :  { %v1190_v2 = vpop.f32.mrf.mxu1 }
 0x320   :  { %v1077_v26 = vadd.f32 %v1371_v22, %v1027_v29  ;;  %v1191_v59 = vadd.f32 %v1190_v2, %v1189_v63  ;;  %v1381_v63 = vld [vmem:[#allocation2 + $0x70] sm:$0xff] }
 0x322   :  { %1093 = vst [vmem:[#allocation8 + $0x20] sm:$0xff] %v1077_v26  ;;  %v1030_v19 = vadd.f32 %v1191_v59, %v2006_v27  ;;  %v1382_v26 = vld [vmem:[#allocation2 + $0x78] sm:$0xff] }
 0x324   :  { %v1078_v55 = vadd.f32 %v1372_v52, %v1030_v19 }
 0x326   :  { %1094 = vst [vmem:[#allocation8 + $0x28] sm:$0xff] %v1078_v55 }
 0x329   :  { %v1192_v31 = vpop.f32.mrf.mxu1 }
 0x32b   :  { %v1193_v33 = vpop.f32.mrf.mxu1 }
 0x32c   :  { %v1194_v49 = vadd.f32 %v1193_v33, %v1192_v31 }
 0x32d   :  { %v1195_v34 = vpop.f32.mrf.mxu1 }
 0x32e   :  { %v1035_v50 = vadd.f32 %v1194_v49, %v2006_v27 }
 0x32f   :  { %v1196_v30 = vpop.f32.mrf.mxu1 }
 0x330   :  { %v1079_v41 = vadd.f32 %v1373_v40, %v1035_v50  ;;  %v1197_v39 = vadd.f32 %v1196_v30, %v1195_v34 }
 0x332   :  { %1095 = vst [vmem:[#allocation8 + $0x30] sm:$0xff] %v1079_v41  ;;  %v1038_v51 = vadd.f32 %v1197_v39, %v2006_v27 }
 0x334   :  { %v1080_v8 = vadd.f32 %v1374_v4, %v1038_v51 }
 0x335   :  { %v1198_v0 = vpop.f32.mrf.mxu1 }
 0x336   :  { %1096 = vst [vmem:[#allocation8 + $0x38] sm:$0xff] %v1080_v8 }
 0x337   :  { %v1199_v18 = vpop.f32.mrf.mxu1 }
 0x338   :  { %v1200_v16 = vadd.f32 %v1199_v18, %v1198_v0 }
 0x339   :  { %v1201_v23 = vpop.f32.mrf.mxu1 }
 0x33a   :  { %v1043_v57 = vadd.f32 %v1200_v16, %v2006_v27 }
 0x33b   :  { %v1202_v24 = vpop.f32.mrf.mxu1 }
 0x33c   :  { %v1081_v14 = vadd.f32 %v1375_v3, %v1043_v57  ;;  %v1203_v32 = vadd.f32 %v1202_v24, %v1201_v23 }
 0x33d   :  { %v1204_v53 = vpop.f32.mrf.mxu1 }
 0x33e   :  { %1097 = vst [vmem:[#allocation8 + $0x40] sm:$0xff] %v1081_v14  ;;  %v1046_v15 = vadd.f32 %v1203_v32, %v2006_v27 }
 0x33f   :  { %v1205_v25 = vpop.f32.mrf.mxu1 }
 0x340   :  { %v1082_v47 = vadd.f32 %v1376_v9, %v1046_v15  ;;  %v1206_v45 = vadd.f32 %v1205_v25, %v1204_v53 }
 0x341   :  { %v1207_v10 = vpop.f32.mrf.mxu1 }
 0x342   :  { %1098 = vst [vmem:[#allocation8 + $0x48] sm:$0xff] %v1082_v47  ;;  %v1051_v37 = vadd.f32 %v1206_v45, %v2006_v27 }
 0x343   :  { %v1208_v13 = vpop.f32.mrf.mxu1 }
 0x344   :  { %v1083_v54 = vadd.f32 %v1377_v56, %v1051_v37  ;;  %v1209_v1 = vadd.f32 %v1208_v13, %v1207_v10 }
 0x345   :  { %v1210_v35 = vpop.f32.mrf.mxu1 }
 0x346   :  { %1099 = vst [vmem:[#allocation8 + $0x50] sm:$0xff] %v1083_v54  ;;  %v1054_v42 = vadd.f32 %v1209_v1, %v2006_v27 }
 0x347   :  { %v1211_v38 = vpop.f32.mrf.mxu1 }
 0x348   :  { %v1084_v5 = vadd.f32 %v1378_v28, %v1054_v42  ;;  %v1212_v20 = vadd.f32 %v1211_v38, %v1210_v35 }
 0x349   :  { %v1213_v44 = vpop.f32.mrf.mxu1 }
 0x34a   :  { %1100 = vst [vmem:[#allocation8 + $0x58] sm:$0xff] %v1084_v5  ;;  %v1059_v58 = vadd.f32 %v1212_v20, %v2006_v27 }
 0x34b   :  { %v1214_v48 = vpop.f32.mrf.mxu1 }
 0x34c   :  { %v1085_v36 = vadd.f32 %v1379_v61, %v1059_v58  ;;  %v1215_v62 = vadd.f32 %v1214_v48, %v1213_v44 }
 0x34d   :  { %v1216_v11 = vpop.f32.mrf.mxu1 }
 0x34e   :  { %1101 = vst [vmem:[#allocation8 + $0x60] sm:$0xff] %v1085_v36  ;;  %v1062_v12 = vadd.f32 %v1215_v62, %v2006_v27 }
 0x34f   :  { %v1217_v43 = vpop.f32.mrf.mxu1 }
 0x350   :  { %v1086_v7 = vadd.f32 %v1380_v6, %v1062_v12  ;;  %v1218_v21 = vadd.f32 %v1217_v43, %v1216_v11 }
 0x351   :  { %v1219_v46 = vpop.f32.mrf.mxu1 }
 0x352   :  { %1102 = vst [vmem:[#allocation8 + $0x68] sm:$0xff] %v1086_v7  ;;  %v1067_v60 = vadd.f32 %v1218_v21, %v2006_v27 }
 0x353   :  { %v1220_v17 = vpop.f32.mrf.mxu1 }
 0x354   :  { %v1087_v29 = vadd.f32 %v1381_v63, %v1067_v60  ;;  %v1221_v2 = vadd.f32 %v1220_v17, %v1219_v46 }
 0x356   :  { %1103 = vst [vmem:[#allocation8 + $0x70] sm:$0xff] %v1087_v29  ;;  %v1070_v22 = vadd.f32 %v1221_v2, %v2006_v27 }
 0x358   :  { %v1088_v59 = vadd.f32 %v1382_v26, %v1070_v22 }
 0x35a   :  { %1104 = vst [vmem:[#allocation8 + $0x78] sm:$0xff] %v1088_v59 }
 0x35b   :  { %1454 = shalt.err (!%p1451_p5)
}
 0x35c   :  { %1116 = dma.vmem_to_hbm [thread:$0]  %s1111_s22, 2048, %s2037_s7, [#allocation4], %s1471_s29, %s1471_s29, %s1472_s30  }
 0x35d   :  { %1467 = dma.done.wait [#allocation4], 2048  }
 0x35e   :  { %1468 = vsyncadd [#allocation4], 4294965248 }
 0x35f   :  { %1120 = vsyncpa [#allocation3], 1 }
 0x360   :  { %1121 = vsyncpa [#allocation6], 1 }
 0x361   :  { %1122 = vsyncpa [#allocation4], 1 }

</bundles_post_ra>
